<compile_context>
chip_gen: v5e
topology: v5e:2x2
jax: 0.10.0
libtpu: 0.0.40
codegen_flags: <defaults>
</compile_context>

<pallas_src>
import math

import jax
import jax.numpy as jnp
from jax.experimental import pallas as pl
from jax.experimental.pallas import tpu as pltpu

_LANE = 128
_SUBLANE = 8
_TARGET_BLOCK_BYTES = 2 << 20  # ~2 MiB of VMEM per (input or output) block buffer


def _round_up(a, b):
    return (a + b - 1) // b * b


def _drop_path_kernel(scale_ref, x_ref, o_ref):
    """scale_ref: (tile_b, 1[, 1]) per-sample scale in x.dtype (0 or 1/keep_prob).
    x_ref / o_ref: matching-rank data tile.  Body = one broadcast multiply."""
    o_ref[...] = x_ref[...] * scale_ref[...]


def drop_path(x, *, drop_prob=0.0, training=True, key=None):
    """JAX/Pallas equivalent of DropPath.forward (per-sample stochastic depth)."""
    if drop_prob == 0.0 or not training:
        return x  # identity path (matches torch early-return)

    keep_prob = 1.0 - drop_prob
    if key is None:
        # NOTE: deterministic drop pattern; pass a fresh key for real training.
        key = jax.random.PRNGKey(0)

    orig_shape = x.shape
    B = int(orig_shape[0])
    M = int(math.prod(orig_shape[1:]))
    itemsize = jnp.dtype(x.dtype).itemsize

    # Per-sample Bernoulli(keep_prob) drawn in the wrapper (no in-kernel PRNG);
    # fold mask and 1/keep_prob into a single per-sample scale in x.dtype.
    keep_mask = jax.random.bernoulli(key, p=keep_prob, shape=(B,))
    scale = jnp.where(keep_mask, 1.0 / keep_prob, 0.0).astype(x.dtype)

    if M >= _LANE and M % _LANE == 0:
        # ---- lane-dense 3-D view: (B, rows, 128); contiguous reshape is free.
        rows = M // _LANE
        x_view = x.reshape(B, rows, _LANE)
        scale_view = scale.reshape(B, 1, 1)

        # Row-tile size: full extent if it fits the budget, else a balanced
        # multiple of 8 sublanes (ragged edge block handled by Pallas).
        max_rows_budget = max(_SUBLANE,
                              _TARGET_BLOCK_BYTES // (B * _LANE * itemsize))
        if rows <= max_rows_budget:
            tile_rows = rows
        else:
            max_rows = max(_SUBLANE, max_rows_budget // _SUBLANE * _SUBLANE)
            n_row_tiles = pl.cdiv(rows, max_rows)
            tile_rows = _round_up(pl.cdiv(rows, n_row_tiles), _SUBLANE)

        # Batch-tile size: keep the whole batch in the block unless that blows
        # the per-block VMEM budget (leading dim has no (8,128) constraint).
        row_bytes_vmem = _round_up(tile_rows, _SUBLANE) * _LANE * itemsize
        tile_b = max(1, min(B, _TARGET_BLOCK_BYTES // row_bytes_vmem))

        grid = (pl.cdiv(rows, tile_rows), pl.cdiv(B, tile_b))
        x_spec = pl.BlockSpec((tile_b, tile_rows, _LANE), lambda r, b: (b, r, 0))
        s_spec = pl.BlockSpec((tile_b, 1, 1), lambda r, b: (b, 0, 0))
        vmem_block = tile_b * row_bytes_vmem
    else:
        # ---- fallback for M not a multiple of 128: (B, M) view, batch on the
        # sublane axis, lane tiles a multiple of 128 (or the full extent).
        x_view = x.reshape(B, M)
        scale_view = scale.reshape(B, 1)

        padded_b = _round_up(B, _SUBLANE)
        max_m_budget = max(_LANE, _TARGET_BLOCK_BYTES // (padded_b * itemsize))
        if M <= max_m_budget:
            tile_m = M  # full extent: legal even when M is not 128-aligned
        else:
            max_m = max(_LANE, max_m_budget // _LANE * _LANE)
            n_m_tiles = pl.cdiv(M, max_m)
            tile_m = _round_up(pl.cdiv(M, n_m_tiles), _LANE)

        grid = (pl.cdiv(M, tile_m),)
        x_spec = pl.BlockSpec((B, tile_m), lambda i: (0, i))
        s_spec = pl.BlockSpec((B, 1), lambda i: (0, 0))
        vmem_block = padded_b * _round_up(tile_m, _LANE) * itemsize

    # 2-deep pipeline x (input + output) buffers + the tiny scale + slack.
    vmem_limit = int(min(32 << 20, max(16 << 20, 4 * vmem_block + (4 << 20))))

    out_view = pl.pallas_call(
        _drop_path_kernel,
        out_shape=jax.ShapeDtypeStruct(x_view.shape, x.dtype),
        grid=grid,
        in_specs=[s_spec, x_spec],
        out_specs=x_spec,
        compiler_params=pltpu.CompilerParams(
            dimension_semantics=("parallel",) * len(grid),
            vmem_limit_bytes=vmem_limit,
        ),
    )(scale_view, x_view)

    return out_view.reshape(orig_shape)


if __name__ == "__main__":
    root = jax.random.PRNGKey(0)
    x_key, mask_key, x2_key, mask2_key = jax.random.split(root, 4)

    drop_prob = 0.25
    keep_prob = 1.0 - drop_prob

    # (batch, seq, hidden) as used in cross_attention.py
    B, N, D = 2, 8, 32
    x = jax.random.normal(x_key, (B, N, D), dtype=jnp.float32)

    out = jax.block_until_ready(
        drop_path(x, drop_prob=drop_prob, training=True, key=mask_key))

    # Reference: the same bernoulli draw gives the same per-sample scale.
    keep_mask_ref = jax.random.bernoulli(mask_key, p=keep_prob, shape=(B,))
    scale_ref = jnp.where(keep_mask_ref, 1.0 / keep_prob, 0.0).astype(x.dtype)
    ref = x * scale_ref[:, None, None]
    assert bool(jnp.allclose(out, ref, atol=1e-6, rtol=1e-6)), \
        "mismatch vs reference (128-aligned path)"

    # Each sample must be either all-zero (dropped) or x / keep_prob (kept).
    for b in range(B):
        kept = jnp.allclose(out[b], x[b] / keep_prob, atol=1e-5)
        dropped = jnp.allclose(out[b], jnp.zeros_like(x[b]), atol=0.0)
        assert bool(kept) or bool(dropped), f"sample {b} has invalid drop-path output"

    # Non-128-multiple per-sample size exercises the (B, M) fallback layout.
    x2 = jax.random.normal(x2_key, (2, 10, 20), dtype=jnp.float32)  # M = 200
    out2 = jax.block_until_ready(
        drop_path(x2, drop_prob=drop_prob, training=True, key=mask2_key))
    keep_mask2 = jax.random.bernoulli(mask2_key, p=keep_prob, shape=(2,))
    ref2 = x2 * jnp.where(keep_mask2, 1.0 / keep_prob, 0.0).astype(x2.dtype)[:, None, None]
    assert bool(jnp.allclose(out2, ref2, atol=1e-6, rtol=1e-6)), \
        "mismatch vs reference (fallback path)"

    # Eval path and drop_prob == 0 path are the identity.
    out_eval = jax.block_until_ready(
        drop_path(x, drop_prob=drop_prob, training=False))
    assert bool(jnp.array_equal(out_eval, x))
    out_p0 = jax.block_until_ready(drop_path(x, drop_prob=0.0, training=True))
    assert bool(jnp.array_equal(out_p0, x))

    print("KERNEL_OK")
</pallas_src>

<mosaic_0001>
module attributes {stable_mosaic.version = 11 : i64} {
  func.func @_drop_path_kernel(%arg0: i32, %arg1: i32, %arg2: memref<2x1x1xf32, #tpu.memory_space<vmem>>, %arg3: memref<2x2x128xf32, #tpu.memory_space<vmem>>, %arg4: memref<2x2x128xf32, #tpu.memory_space<vmem>>) attributes {dimension_semantics = [#tpu.dimension_semantics<parallel>, #tpu.dimension_semantics<parallel>], iteration_bounds = array<i64: 1, 1>, scalar_prefetch = 0 : i64, scratch_operands = 0 : i64, tpu.core_type = #tpu.core_type<tc>, window_params = [{transform_indices = @transform_0, window_bounds = array<i64: 2, 1, 1>}, {transform_indices = @transform_1, window_bounds = array<i64: 2, 2, 128>}, {transform_indices = @transform_2, window_bounds = array<i64: 2, 2, 128>}]} {
    %c0 = arith.constant 0 : index
    %c0_0 = arith.constant 0 : index
    %c0_1 = arith.constant 0 : index
    %0 = vector.load %arg3[%c0, %c0_0, %c0_1] : memref<2x2x128xf32, #tpu.memory_space<vmem>>, vector<2x2x128xf32>
    %c0_2 = arith.constant 0 : index
    %c0_3 = arith.constant 0 : index
    %c0_4 = arith.constant 0 : index
    %1 = vector.load %arg2[%c0_2, %c0_3, %c0_4] : memref<2x1x1xf32, #tpu.memory_space<vmem>>, vector<2x1x1xf32>
    %2 = vector.broadcast %1 : vector<2x1x1xf32> to vector<2x2x128xf32>
    %3 = arith.mulf %0, %2 : vector<2x2x128xf32>
    %c0_5 = arith.constant 0 : index
    %c0_6 = arith.constant 0 : index
    %c0_7 = arith.constant 0 : index
    %4 = vector.load %arg4[%c0_5, %c0_6, %c0_7] : memref<2x2x128xf32, #tpu.memory_space<vmem>>, vector<2x2x128xf32>
    tpu.vector_store %arg4[%c0_5, %c0_6, %c0_7], %3 {strides = array<i32>} : memref<2x2x128xf32, #tpu.memory_space<vmem>>, vector<2x2x128xf32>,
    return
  }
  func.func @transform_0(%arg0: i32, %arg1: i32) -> (i32, i32, i32) {
    %c0_i32 = arith.constant 0 : i32
    %c0_i32_0 = arith.constant 0 : i32
    %c0_i32_1 = arith.constant 0 : i32
    return %arg1, %c0_i32, %c0_i32_0 : i32, i32, i32
  }
  func.func @transform_1(%arg0: i32, %arg1: i32) -> (i32, i32, i32) {
    %c0_i32 = arith.constant 0 : i32
    %c0_i32_0 = arith.constant 0 : i32
    return %arg1, %arg0, %c0_i32 : i32, i32, i32
  }
  func.func @transform_2(%arg0: i32, %arg1: i32) -> (i32, i32, i32) {
    %c0_i32 = arith.constant 0 : i32
    %c0_i32_0 = arith.constant 0 : i32
    return %arg1, %arg0, %c0_i32 : i32, i32, i32
  }
}

</mosaic_0001>

<bundles_post_ra>
// kernel: tpu_custom_call.1
= control target key start
LH: loop header
LB: loop body
LE: loop exit
PB: predicated region body
PF: predicated region fallthrough
CT: control target
= control target key end

     0   :  { %7 = vsyncpa [#allocation3], 0  ;;  %s159_s0 = inlined_call_operand.vmem [shape: f32[2,1,1], index: 0, kind: input, shape index: {}]   ;;  %s160_s1 = inlined_call_operand.hbm [shape: f32[2,2,128], index: 1, kind: input, shape index: {}]   ;;  %s161_s2 = inlined_call_operand.hbm [shape: f32[2,2,128], index: 2, kind: output, shape index: {}]  }
   0x1   :  { %8 = vsyncpa [#allocation4], 0  ;;  %s15_s11 = sshll.u32 %s160_s1, 4  ;;  %s127_s12 = smov [#allocation2]   ;;  %s16_s11 = int_to_ptr.hbm [resolvable:$true] %s15_s11 }
   0x2   :  { %s17_s13 = sshll.u32 %s127_s12, 4  ;;  %s128_s14 = smov 32   ;;  %s18_s13 = int_to_ptr.vmem [resolvable:$true] %s17_s13 }
   0x3   :  { %s129_s15 = smov 2  }
   0x4   :  { %23 = dma.hbm_to_vmem [thread:$0]  %s16_s11, 64, %s18_s13, [#allocation3], %s128_s14, %s128_s14, %s129_s15  }
   0x5   :  { %123 = dma.done.wait [#allocation3], 64  }
   0x6   :  { %124 = vsyncadd [#allocation3], 4294967232  ;;  %v130_v0 = vmov 0   ;;  %v73_v1 = vld [vmem:[%s159_s0] ss:$0 sm:$0xff]  ;;  %s131_s1 = smov [#allocation5]  }
   0x7   :  { %72 = vset.pattern.permute.xlu0 %v130_v0  ;;  %v74_v2 = vld [vmem:[%s159_s0 + $0x1] ss:$0 sm:$0xff]  ;;  %v29_v6 = vld [vmem:[#allocation2 + $0x2] sm:$0x3]  ;;  %s52_s20 = sshll.u32 %s131_s1, 4  ;;  %s54_s23 = sshll.u32 %s161_s2, 4  ;;  %s53_s20 = int_to_ptr.vmem [resolvable:$true] %s52_s20  ;;  %s55_s23 = int_to_ptr.hbm [resolvable:$true] %s54_s23 }
   0x8   :  { %37 = vperm.xlu0 %72, %v73_v1   ;;  %v28_v3 = vld [vmem:[#allocation2] sm:$0x3] }
  0x10   :  { %41 = vperm.xlu0 %72, %v74_v2  }
  0x7a   :  { %v38_v4 = vpop.permute.xlu0 %37 }
  0x7b   :  { %v44_v5 = vmul.f32 %v38_v4, %v28_v3 }
  0x7d   :  { %46 = vst [vmem:[#allocation5] sm:$0x3] %v44_v5 }
  0x82   :  { %v42_v7 = vpop.permute.xlu0 %41 }
  0x83   :  { %v45_v8 = vmul.f32 %v42_v7, %v29_v6 }
  0x85   :  { %47 = vst [vmem:[#allocation5 + $0x2] sm:$0x3] %v45_v8 }
  0x86   :  { %60 = dma.vmem_to_hbm [thread:$0]  %s53_s20, 64, %s55_s23, [#allocation4], %s128_s14, %s128_s14, %s129_s15  }
  0x87   :  { %125 = dma.done.wait [#allocation4], 64  }
  0x88   :  { %126 = vsyncadd [#allocation4], 4294967232 }
  0x89   :  { %65 = vsyncpa [#allocation3], 1 }
  0x8a   :  { %66 = vsyncpa [#allocation4], 1 }

</bundles_post_ra>
